<compile_context>
chip_gen: v6e
topology: v6e:2x2x1
jax: 0.10.0
libtpu: 0.0.40
codegen_flags: <defaults>
</compile_context>

<pallas_src>
import functools

import jax
import jax.numpy as jnp
from jax.experimental import pallas as pl
from jax.experimental.pallas import tpu as pltpu


def _prelu(h, alpha):
    # F.prelu with a single-element weight tensor == leaky relu with that slope.
    return jnp.where(h >= 0, h, alpha * h)


def mlp_kernel(x_ref, w1_ref, b1_ref, w2_ref, b2_ref,
               w3_ref, b3_ref, w4_ref, b4_ref, o_ref, *, alpha):
    cdt = w1_ref.dtype  # compute dtype of the MXU operands (bf16 or f32)

    x = x_ref[...]  # (tile_b, D) in compute dtype

    h = jnp.dot(x, w1_ref[...], preferred_element_type=jnp.float32) + b1_ref[...]
    h = _prelu(h, alpha)
    # dropout1: identity in eval mode.
    # TODO(synk): training-mode dropout (p=0.5) not implemented.

    h = jnp.dot(h.astype(cdt), w2_ref[...], preferred_element_type=jnp.float32) + b2_ref[...]
    h = _prelu(h, alpha)
    # dropout2: identity in eval mode.

    h = jnp.dot(h.astype(cdt), w3_ref[...], preferred_element_type=jnp.float32) + b3_ref[...]
    h = _prelu(h, alpha)  # (tile_b, L) f32

    # fc4 (L -> 1): a width-1 MXU matmul is ~1/128..1/256 lane-utilized; do it on the
    # VPU (elementwise mul) + XLU lane reduce instead.  w4 is a (1, L) f32 row.
    b4 = b4_ref[...]                                   # (1, 1) f32
    y = jnp.sum(h * w4_ref[...], axis=-1) + b4[0, 0]   # (tile_b,) f32

    # Lane-dense store: (1, 1, tile_b) row block.
    o_ref[...] = y[None, None, :].astype(o_ref.dtype)


def _default_tile_b(B):
    # Large B: big tiles (~512-2048 rows) to approach the HBM roofline (per-grid-step
    # overhead ~0.35us).  Small/medium B: keep >=2 grid steps so both v7x TensorCores
    # stay busy and the pipeline can overlap x-tile DMA with compute.
    if B >= 16384:
        return 2048
    if B >= 4096:
        return 1024
    if B >= 1024:
        return 512
    if B >= 64:
        t = -(-B // 4)                 # aim for ~4 grid steps
        return max(8, ((t + 7) // 8) * 8)
    return 8


def architecture_forward(x, params, *, tile_b=None, use_bf16=True, alpha=0.01):
    """x: (B, D). params: PyTorch-convention weights/biases (see init_params)."""
    B, D = x.shape
    f32 = jnp.float32
    cdt = jnp.bfloat16 if use_bf16 else f32

    # PyTorch stores weights as (out, in); transpose to (in, out) for y = x @ W_t + b.
    w1 = params["fc1_w"].T.astype(cdt)        # (D, M)
    w2 = params["fc2_w"].T.astype(cdt)        # (M, P)
    w3 = params["fc3_w"].T.astype(cdt)        # (P, L)
    w4 = params["fc4_w"].astype(f32)          # (1, L) row, stays f32 for the VPU reduce
    b1 = params["fc1_b"].reshape(1, -1).astype(f32)   # (1, M)
    b2 = params["fc2_b"].reshape(1, -1).astype(f32)   # (1, P)
    b3 = params["fc3_b"].reshape(1, -1).astype(f32)   # (1, L)
    b4 = params["fc4_b"].reshape(1, 1).astype(f32)    # (1, 1)
    M, P, L = w1.shape[1], w2.shape[1], w3.shape[1]

    if tile_b is None:
        tile_b = _default_tile_b(B)
    tile_b = max(8, (int(tile_b) // 8) * 8)   # sublane-aligned

    num_tiles = -(-B // tile_b)
    B_pad = num_tiles * tile_b

    xc = x.astype(cdt)
    if B_pad != B:
        xc = jnp.pad(xc, ((0, B_pad - B), (0, 0)))

    # Constant blocks: index_map always returns (0, 0), so Pallas keeps them resident
    # in VMEM and does not re-DMA them on later grid steps.
    const = lambda shape: pl.BlockSpec(shape, lambda i: (0, 0))

    out = pl.pallas_call(
        functools.partial(mlp_kernel, alpha=alpha),
        out_shape=jax.ShapeDtypeStruct((num_tiles, 1, tile_b), jnp.float32),
        grid_spec=pltpu.PrefetchScalarGridSpec(
            num_scalar_prefetch=0,
            grid=(num_tiles,),
            in_specs=[
                pl.BlockSpec((tile_b, D), lambda i: (i, 0)),   # x tile
                const((D, M)), const((1, M)),
                const((M, P)), const((1, P)),
                const((P, L)), const((1, L)),
                const((1, L)), const((1, 1)),
            ],
            out_specs=pl.BlockSpec((1, 1, tile_b), lambda i: (i, 0, 0)),
        ),
        compiler_params=pltpu.CompilerParams(
            dimension_semantics=("parallel",)),
    )(xc, w1, b1, w2, b2, w3, b3, w4, b4)

    # (num_tiles, 1, tile_b) lane-dense slab -> (B, 1) column.
    out = out.reshape(B_pad)[:B].reshape(B, 1)
    return out.astype(x.dtype)


def init_params(key, input_shape, L):
    """Matches Architecture.__init__: PyTorch (out, in) weights ~ N(0,1), zero biases."""
    P = 2 * L
    M = 2 * P
    k1, k2, k3, k4 = jax.random.split(key, 4)
    return {
        "fc1_w": jax.random.normal(k1, (M, input_shape), jnp.float32),
        "fc1_b": jnp.zeros((M,), jnp.float32),
        "fc2_w": jax.random.normal(k2, (P, M), jnp.float32),
        "fc2_b": jnp.zeros((P,), jnp.float32),
        "fc3_w": jax.random.normal(k3, (L, P), jnp.float32),
        "fc3_b": jnp.zeros((L,), jnp.float32),
        "fc4_w": jax.random.normal(k4, (1, L), jnp.float32),
        "fc4_b": jnp.zeros((1,), jnp.float32),
    }


def reference_forward(x, params, alpha=0.01):
    """Pure-JAX reference using the PyTorch (out, in) convention: y = x @ W.T + b."""
    hp = jax.lax.Precision.HIGHEST
    dot = lambda a, w: jnp.dot(a, w.T, precision=hp)
    h = _prelu(dot(x, params["fc1_w"]) + params["fc1_b"], alpha)
    h = _prelu(dot(h, params["fc2_w"]) + params["fc2_b"], alpha)
    h = _prelu(dot(h, params["fc3_w"]) + params["fc3_b"], alpha)
    return dot(h, params["fc4_w"]) + params["fc4_b"]


def _max_norm_err(a, b):
    denom = jnp.maximum(jnp.max(jnp.abs(b)), 1.0)
    return float(jnp.max(jnp.abs(a - b)) / denom)


if __name__ == "__main__":
    key = jax.random.PRNGKey(0)
    k_param, k_x = jax.random.split(key)

    input_shape = 32   # D
    L = 16             # -> P = 32, M = 64
    B = 64             # small batch; default tiling gives a multi-step parallel grid

    params = init_params(k_param, input_shape, L)
    x = jax.random.normal(k_x, (B, input_shape), jnp.float32)

    ref = reference_forward(x, params)

    # f32 path: near-exact match to the PyTorch-convention reference.
    out_f32 = jax.block_until_ready(architecture_forward(x, params, use_bf16=False))
    assert out_f32.shape == (B, 1), out_f32.shape
    assert _max_norm_err(out_f32, ref) < 3e-2, _max_norm_err(out_f32, ref)

    # bf16 path (default): bf16 MXU operands with f32 accumulation; loose tolerance.
    out_bf16 = jax.block_until_ready(architecture_forward(x, params, use_bf16=True))
    assert out_bf16.shape == (B, 1), out_bf16.shape
    assert _max_norm_err(out_bf16, ref) < 1e-1, _max_norm_err(out_bf16, ref)

    # Ragged batch (B not divisible by tile_b) exercises the padding path.
    xr = x[:50]
    out_r = jax.block_until_ready(architecture_forward(xr, params, tile_b=16,
                                                       use_bf16=False))
    assert out_r.shape == (50, 1), out_r.shape
    assert _max_norm_err(out_r, ref[:50]) < 3e-2, _max_norm_err(out_r, ref[:50])

    print("KERNEL_OK")
</pallas_src>

<mosaic_0001>
module attributes {stable_mosaic.version = 11 : i64} {
  func.func @mlp_kernel(%arg0: i32, %arg1: memref<16x32xf32, #tpu.memory_space<vmem>>, %arg2: memref<32x64xf32, #tpu.memory_space<vmem>>, %arg3: memref<1x64xf32, #tpu.memory_space<vmem>>, %arg4: memref<64x32xf32, #tpu.memory_space<vmem>>, %arg5: memref<1x32xf32, #tpu.memory_space<vmem>>, %arg6: memref<32x16xf32, #tpu.memory_space<vmem>>, %arg7: memref<1x16xf32, #tpu.memory_space<vmem>>, %arg8: memref<1x16xf32, #tpu.memory_space<vmem>>, %arg9: memref<1x1xf32, #tpu.memory_space<vmem>>, %arg10: memref<1x1x16xf32, #tpu.memory_space<vmem>>) attributes {dimension_semantics = [#tpu.dimension_semantics<parallel>], iteration_bounds = array<i64: 4>, scalar_prefetch = 0 : i64, scratch_operands = 0 : i64, tpu.core_type = #tpu.core_type<tc>, window_params = [{transform_indices = @transform_0, window_bounds = array<i64: 16, 32>}, {pipeline_mode = #tpu.pipeline_mode<synchronous>, transform_indices = @transform_1, window_bounds = array<i64: 32, 64>}, {pipeline_mode = #tpu.pipeline_mode<synchronous>, transform_indices = @transform_2, window_bounds = array<i64: 1, 64>}, {pipeline_mode = #tpu.pipeline_mode<synchronous>, transform_indices = @transform_3, window_bounds = array<i64: 64, 32>}, {pipeline_mode = #tpu.pipeline_mode<synchronous>, transform_indices = @transform_4, window_bounds = array<i64: 1, 32>}, {pipeline_mode = #tpu.pipeline_mode<synchronous>, transform_indices = @transform_5, window_bounds = array<i64: 32, 16>}, {pipeline_mode = #tpu.pipeline_mode<synchronous>, transform_indices = @transform_6, window_bounds = array<i64: 1, 16>}, {pipeline_mode = #tpu.pipeline_mode<synchronous>, transform_indices = @transform_7, window_bounds = array<i64: 1, 16>}, {pipeline_mode = #tpu.pipeline_mode<synchronous>, transform_indices = @transform_8, window_bounds = array<i64: 1, 1>}, {transform_indices = @transform_9, window_bounds = array<i64: 1, 1, 16>}]} {
    %c0 = arith.constant 0 : index
    %c0_0 = arith.constant 0 : index
    %0 = vector.load %arg1[%c0, %c0_0] : memref<16x32xf32, #tpu.memory_space<vmem>>, vector<16x32xf32>
    %c0_1 = arith.constant 0 : index
    %c0_2 = arith.constant 0 : index
    %1 = vector.load %arg2[%c0_1, %c0_2] : memref<32x64xf32, #tpu.memory_space<vmem>>, vector<32x64xf32>
    %cst = arith.constant dense<0.000000e+00> : vector<16x64xf32>
    %2 = tpu.matmul %0, %1, %cst {dimension_numbers = #tpu.dot_dimension_numbers<[1], [0], [0], [1], [0, 0, 1, 1], [], []>} : vector<16x32xf32>, vector<32x64xf32>, vector<16x64xf32> -> vector<16x64xf32>
    %c0_3 = arith.constant 0 : index
    %c0_4 = arith.constant 0 : index
    %3 = vector.load %arg3[%c0_3, %c0_4] : memref<1x64xf32, #tpu.memory_space<vmem>>, vector<1x64xf32>
    %4 = vector.broadcast %3 : vector<1x64xf32> to vector<16x64xf32>
    %5 = arith.addf %2, %4 : vector<16x64xf32>
    %cst_5 = arith.constant 0.000000e+00 : f32
    %6 = vector.broadcast %cst_5 : f32 to vector<16x64xf32>
    %7 = arith.cmpf oge, %5, %6 : vector<16x64xf32>
    %cst_6 = arith.constant 0.00999999977 : f32
    %8 = vector.broadcast %cst_6 : f32 to vector<16x64xf32>
    %9 = arith.mulf %8, %5 : vector<16x64xf32>
    %10 = arith.select %7, %5, %9 : vector<16x64xi1>, vector<16x64xf32>
    %c0_7 = arith.constant 0 : index
    %c0_8 = arith.constant 0 : index
    %11 = vector.load %arg4[%c0_7, %c0_8] : memref<64x32xf32, #tpu.memory_space<vmem>>, vector<64x32xf32>
    %cst_9 = arith.constant dense<0.000000e+00> : vector<16x32xf32>
    %12 = tpu.matmul %10, %11, %cst_9 {dimension_numbers = #tpu.dot_dimension_numbers<[1], [0], [0], [1], [0, 0, 1, 1], [], []>} : vector<16x64xf32>, vector<64x32xf32>, vector<16x32xf32> -> vector<16x32xf32>
    %c0_10 = arith.constant 0 : index
    %c0_11 = arith.constant 0 : index
    %13 = vector.load %arg5[%c0_10, %c0_11] : memref<1x32xf32, #tpu.memory_space<vmem>>, vector<1x32xf32>
    %14 = vector.broadcast %13 : vector<1x32xf32> to vector<16x32xf32>
    %15 = arith.addf %12, %14 : vector<16x32xf32>
    %cst_12 = arith.constant 0.000000e+00 : f32
    %16 = vector.broadcast %cst_12 : f32 to vector<16x32xf32>
    %17 = arith.cmpf oge, %15, %16 : vector<16x32xf32>
    %cst_13 = arith.constant 0.00999999977 : f32
    %18 = vector.broadcast %cst_13 : f32 to vector<16x32xf32>
    %19 = arith.mulf %18, %15 : vector<16x32xf32>
    %20 = arith.select %17, %15, %19 : vector<16x32xi1>, vector<16x32xf32>
    %c0_14 = arith.constant 0 : index
    %c0_15 = arith.constant 0 : index
    %21 = vector.load %arg6[%c0_14, %c0_15] : memref<32x16xf32, #tpu.memory_space<vmem>>, vector<32x16xf32>
    %cst_16 = arith.constant dense<0.000000e+00> : vector<16x16xf32>
    %22 = tpu.matmul %20, %21, %cst_16 {dimension_numbers = #tpu.dot_dimension_numbers<[1], [0], [0], [1], [0, 0, 1, 1], [], []>} : vector<16x32xf32>, vector<32x16xf32>, vector<16x16xf32> -> vector<16x16xf32>
    %c0_17 = arith.constant 0 : index
    %c0_18 = arith.constant 0 : index
    %23 = vector.load %arg7[%c0_17, %c0_18] : memref<1x16xf32, #tpu.memory_space<vmem>>, vector<1x16xf32>
    %24 = vector.broadcast %23 : vector<1x16xf32> to vector<16x16xf32>
    %25 = arith.addf %22, %24 : vector<16x16xf32>
    %cst_19 = arith.constant 0.000000e+00 : f32
    %26 = vector.broadcast %cst_19 : f32 to vector<16x16xf32>
    %27 = arith.cmpf oge, %25, %26 : vector<16x16xf32>
    %cst_20 = arith.constant 0.00999999977 : f32
    %28 = vector.broadcast %cst_20 : f32 to vector<16x16xf32>
    %29 = arith.mulf %28, %25 : vector<16x16xf32>
    %30 = arith.select %27, %25, %29 : vector<16x16xi1>, vector<16x16xf32>
    %c0_21 = arith.constant 0 : index
    %c0_22 = arith.constant 0 : index
    %31 = vector.load %arg9[%c0_21, %c0_22] : memref<1x1xf32, #tpu.memory_space<vmem>>, vector<1x1xf32>
    %c0_23 = arith.constant 0 : index
    %c0_24 = arith.constant 0 : index
    %32 = vector.load %arg8[%c0_23, %c0_24] : memref<1x16xf32, #tpu.memory_space<vmem>>, vector<1x16xf32>
    %33 = vector.broadcast %32 : vector<1x16xf32> to vector<16x16xf32>
    %34 = arith.mulf %30, %33 : vector<16x16xf32>
    %cst_25 = arith.constant dense<0.000000e+00> : vector<16xf32>
    %35 = vector.multi_reduction <add>, %34, %cst_25 [1] : vector<16x16xf32> to vector<16xf32>
    %36 = vector.extract %31[0, 0] : f32 from vector<1x1xf32>
    %37 = vector.broadcast %36 : f32 to vector<16xf32>
    %38 = arith.addf %35, %37 : vector<16xf32>
    %39 = vector.shape_cast %38 : vector<16xf32> to vector<1x1x16xf32>
    %c0_26 = arith.constant 0 : index
    %c0_27 = arith.constant 0 : index
    %c0_28 = arith.constant 0 : index
    %40 = vector.load %arg10[%c0_26, %c0_27, %c0_28] : memref<1x1x16xf32, #tpu.memory_space<vmem>>, vector<1x1x16xf32>
    tpu.vector_store %arg10[%c0_26, %c0_27, %c0_28], %39 {strides = array<i32>} : memref<1x1x16xf32, #tpu.memory_space<vmem>>, vector<1x1x16xf32>,
    return
  }
  func.func @transform_0(%arg0: i32) -> (i32, i32) {
    %c0_i32 = arith.constant 0 : i32
    %c0_i32_0 = arith.constant 0 : i32
    return %arg0, %c0_i32 : i32, i32
  }
  func.func @transform_1(%arg0: i32) -> (i32, i32) {
    %c0_i32 = arith.constant 0 : i32
    %c0_i32_0 = arith.constant 0 : i32
    %c0_i32_1 = arith.constant 0 : i32
    return %c0_i32, %c0_i32_0 : i32, i32
  }
  func.func @transform_2(%arg0: i32) -> (i32, i32) {
    %c0_i32 = arith.constant 0 : i32
    %c0_i32_0 = arith.constant 0 : i32
    %c0_i32_1 = arith.constant 0 : i32
    return %c0_i32, %c0_i32_0 : i32, i32
  }
  func.func @transform_3(%arg0: i32) -> (i32, i32) {
    %c0_i32 = arith.constant 0 : i32
    %c0_i32_0 = arith.constant 0 : i32
    %c0_i32_1 = arith.constant 0 : i32
    return %c0_i32, %c0_i32_0 : i32, i32
  }
  func.func @transform_4(%arg0: i32) -> (i32, i32) {
    %c0_i32 = arith.constant 0 : i32
    %c0_i32_0 = arith.constant 0 : i32
    %c0_i32_1 = arith.constant 0 : i32
    return %c0_i32, %c0_i32_0 : i32, i32
  }
  func.func @transform_5(%arg0: i32) -> (i32, i32) {
    %c0_i32 = arith.constant 0 : i32
    %c0_i32_0 = arith.constant 0 : i32
    %c0_i32_1 = arith.constant 0 : i32
    return %c0_i32, %c0_i32_0 : i32, i32
  }
  func.func @transform_6(%arg0: i32) -> (i32, i32) {
    %c0_i32 = arith.constant 0 : i32
    %c0_i32_0 = arith.constant 0 : i32
    %c0_i32_1 = arith.constant 0 : i32
    return %c0_i32, %c0_i32_0 : i32, i32
  }
  func.func @transform_7(%arg0: i32) -> (i32, i32) {
    %c0_i32 = arith.constant 0 : i32
    %c0_i32_0 = arith.constant 0 : i32
    %c0_i32_1 = arith.constant 0 : i32
    return %c0_i32, %c0_i32_0 : i32, i32
  }
  func.func @transform_8(%arg0: i32) -> (i32, i32) {
    %c0_i32 = arith.constant 0 : i32
    %c0_i32_0 = arith.constant 0 : i32
    %c0_i32_1 = arith.constant 0 : i32
    return %c0_i32, %c0_i32_0 : i32, i32
  }
  func.func @transform_9(%arg0: i32) -> (i32, i32, i32) {
    %c0_i32 = arith.constant 0 : i32
    %c0_i32_0 = arith.constant 0 : i32
    %c0_i32_1 = arith.constant 0 : i32
    return %arg0, %c0_i32, %c0_i32_0 : i32, i32, i32
  }
}

</mosaic_0001>

<bundles_post_ra>
// kernel: tpu_custom_call.1
= control target key start
LH: loop header
LB: loop body
LE: loop exit
PB: predicated region body
PF: predicated region fallthrough
CT: control target
= control target key end

     0   :  { %s1138_s0 = inlined_call_operand.vmem [shape: f32[64,32], index: 0, kind: input, shape index: {}]   ;;  %s1139_s1 = inlined_call_operand.vmem [shape: f32[32,64], index: 1, kind: input, shape index: {}]   ;;  %s1140_s2 = inlined_call_operand.vmem [shape: f32[1,64], index: 2, kind: input, shape index: {}]   ;;  %s1141_s3 = inlined_call_operand.vmem [shape: f32[64,32], index: 3, kind: input, shape index: {}]   ;;  %s1142_s4 = inlined_call_operand.vmem [shape: f32[1,32], index: 4, kind: input, shape index: {}]   ;;  %s1143_s5 = inlined_call_operand.vmem [shape: f32[32,16], index: 5, kind: input, shape index: {}]   ;;  %s1144_s6 = inlined_call_operand.vmem [shape: f32[1,16], index: 6, kind: input, shape index: {}]   ;;  %s1145_s7 = inlined_call_operand.vmem [shape: f32[1,16], index: 7, kind: input, shape index: {}]   ;;  %s1146_s8 = inlined_call_operand.<no memory space> [shape: f32[1,1], index: 8, kind: input, shape index: {}]   ;;  %s1147_s9 = inlined_call_operand.hbm [shape: f32[4,1,16], index: 9, kind: output, shape index: {}]  }
   0x1   :  { %v14_v0 = vstv %s1146_s8 }
   0x2   :  { %15 = vst [vmem:[#allocation2] sm:$0x1] %v14_v0 }
   0x3   :  { %16 = vsyncpa [#allocation4], 0 }
   0x4   :  { %18 = vsyncpa [#allocation4 + $0x1], 0  ;;  %s982_s11 = smov 0   ;;  %s984_s12 = smov 0  }
   0x5   :  { %s986_s13 = smov 0   ;;  %s988_s14 = smov 0  }
   0x6 LB: > { %s1003_s8 = sadd.s32 4294967295, %s926_s14   ;;  %s743_s15 = sadd.s32 4294967294, %s926_s14   ;;  %s926_s14 = sphi %s988_s14, %s1153_s14   ;;  %s922_s13 = sphi %s986_s13, %s1152_s13   ;;  %s918_s12 = sphi %s984_s12, %s1151_s12   ;;  %s914_s11 = sphi %s982_s11, %s1150_s11  }
   0x7   : > { %s1007_s16 = sadd.s32 1, %s926_s14   ;;  %s225_s17 = sadd.s32 1, %s922_s13 }
   0x8   : > { %s222_s18 = ssub.s32 %s926_s14, %s1007_s16  ;;  %p235_p0 = scmp.ne.s32.totalorder %s922_s13, %s918_s12 }
   0x9   : > { %p223_p1 = scmp.eq.s32.totalorder %s222_s18, 0  ;;  %p236_p2 = scmp.eq.s32.totalorder %s1003_s8, 3 }
   0xa   : > { %p241_p3 = scmp.ne.s32.totalorder %s918_s12, %s914_s11  ;;  %p242_p4 = scmp.eq.s32.totalorder %s743_s15, 3 }
   0xb   : > { %s1018_s19 = scalar_select %p223_p1, %s922_s13, %s225_s17  }
   0xc   : > { %p1020_p5 = por %p236_p2, %p235_p0  ;;  %p1024_p6 = por %p242_p4, %p241_p3 }
   0xd   : > { %p746_p7 = scmp.ge.s32.totalorder %s926_s14, 1  ;;  %p293_p8 = scmp.lt.s32.totalorder %s926_s14, 5 }
   0xf   : > { %p294_p9 = pnand %p746_p7, %p293_p8 }
  0x10   : > { %s747_s26 = sshll.u32 (!%p294_p9), %s1003_s8, 1  ;;  %s326_s30 = sand.u32 (!%p294_p9), 1, %s918_s12  }
  0x11   : > { %297 = sbr.rel (%p294_p9) target bundleno = 796 (0x31c), region = 56  ;;  %p329_p10 = scmp.lt.s32.totalorder (!%p294_p9), %s747_s26, 7 }
  0x12   : > { %s327_s10 = scalar_lea.vmem (!%p294_p9), [#allocation3], %s326_s30  ;;  %s676_s23 = scalar_lea.sflag (!%p294_p9), [#allocation4], %s326_s30 }
  0x13   : > { %s688_s15 = sshll.u32 (!%p294_p9), %s327_s10, 4  ;;  %s689_s15 = int_to_ptr.vmem [resolvable:$true] %s688_s15 }
  0x16   : > { %v339_v1 = vld [vmem:[%s1139_s1 + $0x18] sm:$0xff]  ;;  %v338_v2 = vld [vmem:[%s1139_s1 + $0x10] sm:$0xff]  ;;  %v337_v5 = vld [vmem:[%s1139_s1 + $0x8] sm:$0xff]  ;;  %s1155_s26 = smov (!%p329_p10, %s747_s26), 7  ;;  %vm347_vm0 = vcmask 261120   ;;  %vm450_vm3 = vcmask 523264   ;;  %v659_v52 = vlaneseq }
  0x17   : > { %784 = vmatprep.subr.mxu0 %v339_v1  ;;  %v442_v3 = vld [vmem:[%s1141_s3 + $0x38] sm:$0xff]  ;;  %v441_v4 = vld [vmem:[%s1141_s3 + $0x30] sm:$0xff]  ;;  %v440_v6 = vld [vmem:[%s1141_s3 + $0x28] sm:$0xff]  ;;  %s748_s24 = sshll.u32 %s1155_s26, 3  ;;  %vm646_vm8 = vcmask 130048   ;;  %s759_s26 = sshll.u32 %s1003_s8, 4 }
  0x18   : > { %785 = vmatpush3.msra.mxu0 %v339_v1  ;;  %795 = vmatprep.subr.mxu1 %v442_v3  ;;  %v336_v7 = vld [vmem:[%s1139_s1] sm:$0xff]  ;;  %s332_s28 = scalar_lea.vmem %s1138_s0, %s748_s24  ;;  %v438_v11 = vld [vmem:[%s1141_s3 + $0x18] sm:$0xff]  ;;  %v437_v12 = vld [vmem:[%s1141_s3 + $0x10] sm:$0xff]  ;;  %v660_v53 = vand.u32 127, %v659_v52  ;;  %v662_v54 = vshrl.u32 %v659_v52, 7  ;;  %vm670_vm9 = vcmask 130112   ;;  %s1103_s22 = scalar_lea.hbm %s1147_s9, %s759_s26 }
  0x19   : > { %786 = vmatprep.subr.mxu0 %v338_v2  ;;  %796 = vmatpush3.msra.mxu1 %v442_v3  ;;  %v439_v8 = vld [vmem:[%s1141_s3 + $0x20] sm:$0xff]  ;;  %v335_v10 = vld [vmem:[%s332_s28 + $0x8] sm:$0xff]  ;;  %v541_v24 = vld [vmem:[%s1143_s5 + $0x18] sm:$0xff]  ;;  %vm673_vm10 = vcmask 122880   ;;  %s866_s24 = scalar_lea.vmem %s689_s15, 16  ;;  %s928_s8 = smov [#allocation3]  }
  0x1a   : > { %787 = vmatpush3.msra.mxu0 %v338_v2  ;;  %797 = vmatprep.subr.mxu1 %v441_v4  ;;  %v334_v9 = vld [vmem:[%s332_s28] sm:$0xff]  ;;  %v436_v13 = vld [vmem:[%s1141_s3 + $0x8] sm:$0xff]  ;;  %v540_v25 = vld [vmem:[%s1143_s5 + $0x10] sm:$0xff]  ;;  %v665_v55 = vadd.s32 4294967288, %v660_v53  ;;  %v663_v58 = vsub.s32 %v660_v53, %v662_v54  ;;  %p867_p11 = scmp.ne.s32.totalorder %s689_s15, %s866_s24  ;;  %s870_s25 = sshll.u32 %s928_s8, 4  ;;  %s871_s25 = int_to_ptr.vmem [resolvable:$false] %s870_s25 }
  0x1b   : > { %788 = vmatprep.subr.mxu0 %v337_v5  ;;  %798 = vmatpush3.msra.mxu1 %v441_v4  ;;  %v435_v14 = vld [vmem:[%s1141_s3] sm:$0xff]  ;;  %v539_v26 = vld [vmem:[%s1143_s5 + $0x8] sm:$0xff]  ;;  %s872_s27 = scalar_lea.vmem %s871_s25, 32  ;;  %p873_p0 = scmp.lt.s32.totalorder %s689_s15, %s871_s25 }
  0x1c   : > { %789 = vmatpush3.msra.mxu0 %v337_v5  ;;  %799 = vmatprep.subr.mxu1 %v440_v6  ;;  %v749_v15 = vld [vmem:[%s1140_s2] ss:$0 sm:$0xff]  ;;  %v668_v60 = vsub.s32 %v665_v55, %v662_v54  ;;  %p868_p12 = pnand %p867_p11, %p1020_p5  ;;  %p874_p1 = scmp.lt.s32.totalorder %s872_s27, %s866_s24 }
  0x1d   : > { %790 = vmatprep.subr.mxu0 %v336_v7  ;;  %800 = vmatpush3.msra.mxu1 %v440_v6  ;;  %v538_v27 = vld [vmem:[%s1143_s5] sm:$0xff] }
  0x1e   : > { %791 = vmatpush3.msra.mxu0 %v336_v7  ;;  %792 = vmatprep.mubr.msk.f32.mxu0 %vm347_vm0, %v334_v9  ;;  %v752_v28 = vld [vmem:[%s1142_s4] ss:$0 sm:$0xff]  ;;  %p869_p13 = pneg %p868_p12  ;;  %p875_p2 = por %p874_p1, %p873_p0 }
  0x1f   : > { %793 = vmatmul.mubr.msk.f32.vlgmr.msra.gmra.mxu0 %vm347_vm0, %v335_v10  ;;  %801 = vmatprep.subr.mxu1 %v439_v8  ;;  %v636_v37 = vld [vmem:[#allocation2] sm:$0x1] }
  0x20   : > { %802 = vmatpush3.msra.mxu1 %v439_v8  ;;  %814 = vmatprep.subr.mxu0 %v541_v24  ;;  %825 = vpush %v636_v37  ;;  %v755_v38 = vld [vmem:[%s1144_s6] ss:$0 sm:$0xff]  ;;  %p876_p3 = pnand %p875_p2, %p869_p13 }
  0x21   : > { %803 = vmatprep.subr.mxu1 %v438_v11  ;;  %815 = vmatpush3.msra.mxu0 %v541_v24  ;;  %v758_v46 = vld [vmem:[%s1145_s7] ss:$0 sm:$0xff] }
  0x22   : > { %804 = vmatpush3.msra.mxu1 %v438_v11  ;;  %816 = vmatprep.subr.mxu0 %v540_v25 }
  0x23   : > { %805 = vmatprep.subr.mxu1 %v437_v12  ;;  %817 = vmatpush3.msra.mxu0 %v540_v25 }
  0x24   : > { %806 = vmatpush3.msra.mxu1 %v437_v12  ;;  %818 = vmatprep.subr.mxu0 %v539_v26 }
  0x25   : > { %807 = vmatprep.subr.mxu1 %v436_v13  ;;  %819 = vmatpush3.msra.mxu0 %v539_v26 }
  0x26   : > { %808 = vmatpush3.msra.mxu1 %v436_v13  ;;  %820 = vmatprep.subr.mxu0 %v538_v27 }
  0x27   : > { %809 = vmatprep.subr.mxu1 %v435_v14  ;;  %821 = vmatpush3.msra.mxu0 %v538_v27 }
  0x28   : > { %810 = vmatpush3.msra.mxu1 %v435_v14 }
  0x51   : > { %s826_s29 = spop %825 }
  0x52   : > { %v654_v56 = vstv %s826_s29 }
  0xdf   : > { %v794_v16 = vpop.f32.mrf.mxu0 }
  0xe0   : > { %v426_v17 = vadd.f32 %v794_v16, %v749_v15 }
  0xe1   : > { %v420_v18 = vpop.f32.mrf.mxu0 }
  0xe2   : > { %v421_v19 = vadd.f32 %v749_v15, %v420_v18  ;;  %v432_v20 = vmul.f32 0.01, %v426_v17  ;;  %vm430_vm1 = vcmp.ge.f32.partialorder %v426_v17, 0.0 }
  0xe4   : > { %vm429_vm2 = vcmp.ge.f32.partialorder %v421_v19, 0.0  ;;  %v431_v21 = vmul.f32 0.01, %v421_v19  ;;  %v434_v23 = vsel %vm430_vm1, %v426_v17, %v432_v20 }
  0xe6   : > { %v433_v22 = vsel %vm429_vm2, %v421_v19, %v431_v21 }
  0xe7   : > { %811 = vmatprep.mubr.msk.f32.mxu1 %vm450_vm3, %v433_v22 }
  0xe8   : > { %812 = vmatmul.mubr.msk.f32.vlgmr.msra.gmra.mxu1 %vm450_vm3, %v434_v23 }
 0x1a8   : > { %v813_v29 = vpop.f32.mrf.mxu1 }
 0x1a9   : > { %v529_v30 = vadd.f32 %v813_v29, %v752_v28 }
 0x1aa   : > { %v523_v31 = vpop.f32.mrf.mxu1 }
 0x1ab   : > { %v524_v32 = vadd.f32 %v752_v28, %v523_v31  ;;  %v535_v33 = vmul.f32 0.01, %v529_v30  ;;  %vm533_vm4 = vcmp.ge.f32.partialorder %v529_v30, 0.0 }
 0x1ad   : > { %vm532_vm5 = vcmp.ge.f32.partialorder %v524_v32, 0.0  ;;  %v534_v34 = vmul.f32 0.01, %v524_v32  ;;  %v537_v36 = vsel %vm533_vm4, %v529_v30, %v535_v33 }
 0x1af   : > { %v536_v35 = vsel %vm532_vm5, %v524_v32, %v534_v34 }
 0x1b0   : > { %822 = vmatprep.mubr.msk.f32.mxu0 %vm347_vm0, %v536_v35 }
 0x1b1   : > { %823 = vmatmul.mubr.msk.f32.vlgmr.msra.gmra.mxu0 %vm347_vm0, %v537_v36 }
 0x271   : > { %v824_v39 = vpop.f32.mrf.mxu0 }
 0x272   : > { %v627_v40 = vadd.f32 %v824_v39, %v755_v38 }
 0x273   : > { %v621_v41 = vpop.f32.mrf.mxu0 }
 0x274   : > { %v633_v42 = vmul.f32 0.01, %v627_v40  ;;  %v622_v43 = vadd.f32 %v755_v38, %v621_v41  ;;  %vm631_vm6 = vcmp.ge.f32.partialorder %v627_v40, 0.0 }
 0x276   : > { %v632_v44 = vmul.f32 0.01, %v622_v43  ;;  %vm630_vm7 = vcmp.ge.f32.partialorder %v622_v43, 0.0  ;;  %v635_v47 = vsel %vm631_vm6, %v627_v40, %v633_v42 }
 0x277   : > { %v645_v50 = vmul.f32 %v758_v46, %v635_v47 }
 0x278   : > { %v634_v45 = vsel %vm630_vm7, %v622_v43, %v632_v44 }
 0x279   : > { %v644_v48 = vmul.f32 %v758_v46, %v634_v45  ;;  %v650_v51 = vsel %vm646_vm8, %v645_v50, 0.0 }
 0x27b   : > { %v647_v49 = vsel %vm646_vm8, %v644_v48, 0.0 }
 0x27c   : > { %648 = vadd.xlane.f32.xlu0 %v647_v49 }
 0x280   : > { %651 = vadd.xlane.f32.xlu0 %v650_v51 }
 0x305   : > { %v649_v57 = vpop.xlane.xlu0 %648 }
 0x306   : > { %v655_v59 = vadd.f32 %v654_v56, %v649_v57 }
 0x308   : > { %v664_v63 = vrot.slane %v655_v59, %v663_v58 }
 0x309   : > { %v652_v61 = vpop.xlane.xlu0 %651 }
 0x30a   : > { %v656_v62 = vadd.f32 %v654_v56, %v652_v61 }
 0x30c   : > { %v669_v0 = vrot.slane %v656_v62, %v668_v60 }
 0x30e   : > { %v671_v1 = vsel %vm670_vm9, %v669_v0, %v664_v63 }
 0x30f   : > { %674 = vst.msk [vmem:[%s327_s10] sm:$0x1] %vm673_vm10, %v671_v1 }
 0x310   : > { %879 = shalt.err (!%p876_p3)
}
 0x311   : > { %s880_s28 = scalar_lea.hbm %s1103_s22, 16  ;;  %s884_s26 = scalar_lea.hbm %s1147_s9, 64 }
 0x312   : > { %p881_p4 = scmp.ne.s32.totalorder %s1103_s22, %s880_s28  ;;  %p885_p9 = scmp.lt.s32.totalorder %s1103_s22, %s1147_s9 }
 0x313   : > { %p886_p10 = scmp.lt.s32.totalorder %s884_s26, %s880_s28 }
 0x314   : > { %p882_p7 = pnand %p881_p4, %p1020_p5 }
 0x315   : > { %p887_p11 = por %p886_p10, %p885_p9 }
 0x316   : > { %p883_p8 = pneg %p882_p7 }
 0x318   : > { %p888_p12 = pnand %p887_p11, %p883_p8 }
 0x31a   : > { %891 = shalt.err (!%p888_p12)
}
 0x31b   : > { %827 = dma.vmem_to_hbm [thread:$0]  (%p1020_p5), %s689_s15, 16, %s1103_s22, %s676_s23  }
 0x31c PF: > { %p833_p13 = scmp.ge.s32.totalorder %s926_s14, 2  ;;  %s700_s18 = sand.u32 1, %s914_s11  }
 0x31d   : > { %s701_s24 = scalar_lea.sflag [#allocation4], %s700_s18 }
 0x31e   : > { %p830_p0 = pnand %p833_p13, %p1024_p6 }
 0x320   : > { %p831_p1 = pneg %p830_p0 }
 0x322   : > { %909 = dma.done.wait (%p831_p1), %s701_s24, 16  }
 0x323   : > { %911 = vsyncadd (%p831_p1), %s701_s24, 4294967280  ;;  %p21_p2 = scmp.ge.s32.totalorder %s1007_s16, 6   ;;  %s1150_s11 = smov %s918_s12 }
 0x324   : > { %s1151_s12 = smov %s922_s13  ;;  %s1152_s13 = smov %s1018_s19 }
 0x325   : > { %s1153_s14 = smov %s1007_s16  ;;  %23 = sbr.rel (!%p21_p2) target bundleno = 6 (0x6), region = 91 }
 0x32a   :  { %705 = vsyncpa [#allocation4], 1 }
 0x32b   :  { %707 = vsyncpa [#allocation4 + $0x1], 1 }

</bundles_post_ra>
